<compile_context>
chip_gen: v7x
topology: tpu7x:2x2x1
jax: 0.10.0
libtpu: 0.0.40
codegen_flags: <defaults>
</compile_context>

<pallas_src>
import functools

import jax
import jax.numpy as jnp
from jax.experimental import pallas as pl
from jax.experimental.pallas import tpu as pltpu


def _loss10_kernel(inv_uv_count, inv_l1_count,
                   uv_pred_ref, uv_gt_ref, v3d_ref, model_ref, out_ref):
    # Inputs are small sublane+lane dense 2-D VMEM blocks (rows, 128).
    # Upcast to f32 before any arithmetic (required on v5e: no bf16 VPU path;
    # no-op for f32 inputs).  TODO(synk): on v6e/v7x a bf16 input could keep
    # the sub/abs stage in bf16 and only cast to f32 for the sum.
    uv_pred = uv_pred_ref[...].astype(jnp.float32)
    uv_gt = uv_gt_ref[...].astype(jnp.float32)
    v3d = v3d_ref[...].astype(jnp.float32)
    model = model_ref[...].astype(jnp.float32)

    out_ref[0] = jnp.sum(jnp.abs(uv_pred - uv_gt)) * inv_uv_count
    out_ref[1] = jnp.sum(jnp.abs(v3d - model * 9.0)) * inv_l1_count


def _sublane_dense(x):
    """Flatten to (total/128, 128) when possible (dense vregs), else (rows, -1)."""
    n = x.size
    if n % 128 == 0:
        return x.reshape(n // 128, 128)
    return x.reshape(x.shape[0], -1)


def _fused_l1_means(uv_pred2d, uv_gt2d, v3d2d, model2d):
    """One pallas_call computing both L1 means; returns f32[2]:
       [0] = mean(|uv_pred - uv_gt|), [1] = mean(|v3d - 9*model|)."""
    kernel = functools.partial(
        _loss10_kernel,
        1.0 / float(uv_pred2d.size),
        1.0 / float(v3d2d.size),
    )
    n_uv = uv_pred2d.size
    n_v3 = v3d2d.size
    bytes_accessed = int(
        2 * n_uv * uv_pred2d.dtype.itemsize
        + 2 * n_v3 * v3d2d.dtype.itemsize
        + 2 * 4
    )
    # sub + abs per element pair, plus reduce adds, plus scale/mul epilogue.
    flops = int(3 * (n_uv + n_v3) + 4)
    return pl.pallas_call(
        kernel,
        out_shape=jax.ShapeDtypeStruct((2,), jnp.float32),
        in_specs=[
            pl.BlockSpec(memory_space=pltpu.VMEM),
            pl.BlockSpec(memory_space=pltpu.VMEM),
            pl.BlockSpec(memory_space=pltpu.VMEM),
            pl.BlockSpec(memory_space=pltpu.VMEM),
        ],
        out_specs=pl.BlockSpec(memory_space=pltpu.SMEM),
        cost_estimate=pl.CostEstimate(
            flops=flops, transcendentals=0, bytes_accessed=bytes_accessed),
    )(uv_pred2d, uv_gt2d, v3d2d, model2d)


def make_loss10_buffers():
    """Deterministic re-creation of the module's registered buffers."""
    idx = jnp.array(
        [600, 601, 602, 591, 592, 593, 981, 982, 983, 987, 988, 989, 1044, 1045,
         1046, 2343, 2344, 2345, 2289, 2290, 2291, 2286, 2287, 2288, 1938, 1939,
         1940, 1947, 1948, 1949, 45, 46, 47, 39, 40, 41, 30, 31, 32, 24, 25, 26,
         924, 925, 926, 228, 229, 230, 12, 13, 14, 1575, 1576, 1577, 2229, 2230,
         2231, 3303, 3304, 3305, 3288, 3289, 3290, 3276, 3277, 3278, 3579, 3580,
         3581, 3588, 3589, 3590, 3318, 3319, 3320, 3504, 3505, 3506, 3234, 3235,
         3236, 3222, 3223, 3224, 3207, 3208, 3209, 3483, 3484, 3485, 3495, 3496,
         3497, 570, 571, 572, 324, 325, 326, 282, 283, 284, 63, 64, 65, 1629,
         1630, 1631, 1671, 1672, 1673, 1917, 1918, 1919, 2139, 2140, 2141, 2118,
         2119, 2120, 84, 85, 86, 813, 814, 815, 834, 835, 836, 1218, 1219, 1220,
         285, 286, 287, 69, 70, 71, 1632, 1633, 1634, 2508, 2509, 2510, 2124,
         2125, 2126, 78, 79, 80, 819, 820, 821],
        dtype=jnp.int32,
    )
    mask = jnp.ones((3660,), jnp.float32).at[idx].set(10.0)
    return {"mask": mask}  # NOTE: unused in forward, kept for parity.


def loss10_forward(ver3d_pred, uv_pred, nocs, model, uv_gt):
    """JAX/Pallas equivalent of Loss10.forward.

    Args:
      ver3d_pred: (bs, n_pts, 3)
      uv_pred:    (bs, n_pts, 2)
      nocs:       (bs, n_pts, 3)   -- unused by the reference forward
      model:      (bs, n_pts, 3)
      uv_gt:      (bs, n_pts, 2)
    Returns:
      (total_loss, l1_loss, uv_loss) as float32 scalars.
    """
    del nocs  # unused (inst_shape = ver3d_pred / 9.0 is also dead code)
    uv_wt = 1.0
    l1_wt = 1.0

    # Wrapper-side reshape to sublane+lane dense (rows, 128) layouts:
    # contiguous DMA, fully packed vregs inside the kernel.
    uv_pred2d = _sublane_dense(uv_pred)
    uv_gt2d = _sublane_dense(uv_gt)
    v3d2d = _sublane_dense(ver3d_pred)
    model2d = _sublane_dense(model)

    losses = _fused_l1_means(uv_pred2d, uv_gt2d, v3d2d, model2d)
    uv_loss = losses[0] * uv_wt
    l1_loss = losses[1] * l1_wt
    total_loss = l1_loss
    return total_loss, l1_loss, uv_loss


if __name__ == "__main__":
    key = jax.random.PRNGKey(0)
    bs, n_pts = 2, 128
    k1, k2, k3, k4, k5 = jax.random.split(key, 5)

    ver3d_pred = jax.random.normal(k1, (bs, n_pts, 3), jnp.float32)
    uv_pred = jax.random.normal(k2, (bs, n_pts, 2), jnp.float32)
    nocs = jax.random.normal(k3, (bs, n_pts, 3), jnp.float32)
    model = jax.random.normal(k4, (bs, n_pts, 3), jnp.float32)
    uv_gt = jax.random.normal(k5, (bs, n_pts, 2), jnp.float32)

    _ = make_loss10_buffers()  # deterministic buffer init (unused in forward)

    total_loss, l1_loss, uv_loss = loss10_forward(
        ver3d_pred, uv_pred, nocs, model, uv_gt
    )
    jax.block_until_ready((total_loss, l1_loss, uv_loss))

    # Sanity-check against a pure-JAX reference of the PyTorch semantics.
    ref_uv = jnp.mean(jnp.abs(uv_pred - uv_gt))
    ref_l1 = jnp.mean(jnp.abs(ver3d_pred - model * 9.0))
    assert jnp.allclose(uv_loss, ref_uv, rtol=1e-5, atol=1e-6)
    assert jnp.allclose(l1_loss, ref_l1, rtol=1e-5, atol=1e-6)
    assert jnp.allclose(total_loss, ref_l1, rtol=1e-5, atol=1e-6)

    print("KERNEL_OK")
</pallas_src>

<mosaic_0001>
module attributes {stable_mosaic.version = 11 : i64} {
  func.func @_loss10_kernel(%arg0: memref<4x128xf32, #tpu.memory_space<vmem>>, %arg1: memref<4x128xf32, #tpu.memory_space<vmem>>, %arg2: memref<6x128xf32, #tpu.memory_space<vmem>>, %arg3: memref<6x128xf32, #tpu.memory_space<vmem>>, %arg4: memref<2xf32, #tpu.memory_space<smem>>) attributes {dimension_semantics = [], scalar_prefetch = 0 : i64, scratch_operands = 0 : i64, tpu.core_type = #tpu.core_type<tc>} {
    %c0 = arith.constant 0 : index
    %c0_0 = arith.constant 0 : index
    %0 = vector.load %arg0[%c0, %c0_0] : memref<4x128xf32, #tpu.memory_space<vmem>>, vector<4x128xf32>
    %c0_1 = arith.constant 0 : index
    %c0_2 = arith.constant 0 : index
    %1 = vector.load %arg1[%c0_1, %c0_2] : memref<4x128xf32, #tpu.memory_space<vmem>>, vector<4x128xf32>
    %c0_3 = arith.constant 0 : index
    %c0_4 = arith.constant 0 : index
    %2 = vector.load %arg2[%c0_3, %c0_4] : memref<6x128xf32, #tpu.memory_space<vmem>>, vector<6x128xf32>
    %c0_5 = arith.constant 0 : index
    %c0_6 = arith.constant 0 : index
    %3 = vector.load %arg3[%c0_5, %c0_6] : memref<6x128xf32, #tpu.memory_space<vmem>>, vector<6x128xf32>
    %4 = arith.subf %0, %1 : vector<4x128xf32>
    %5 = math.absf %4 : vector<4x128xf32>
    %6 = vector.shape_cast %5 : vector<4x128xf32> to vector<1x4x128xf32>
    %cst = arith.constant dense<0.000000e+00> : vector<1xf32>
    %7 = vector.multi_reduction <add>, %6, %cst [1, 2] : vector<1x4x128xf32> to vector<1xf32>
    %8 = vector.shape_cast %7 : vector<1xf32> to vector<1x1x1xf32>
    %9 = vector.extract %8[0, 0, 0] : f32 from vector<1x1x1xf32>
    %cst_7 = arith.constant 0.001953125 : f32
    %10 = arith.mulf %9, %cst_7 : f32
    %c0_8 = arith.constant 0 : index
    %11 = memref.load %arg4[%c0_8] : memref<2xf32, #tpu.memory_space<smem>>
    memref.store %10, %arg4[%c0_8] : memref<2xf32, #tpu.memory_space<smem>>
    %cst_9 = arith.constant 9.000000e+00 : f32
    %12 = vector.broadcast %cst_9 : f32 to vector<6x128xf32>
    %13 = arith.mulf %3, %12 : vector<6x128xf32>
    %14 = arith.subf %2, %13 : vector<6x128xf32>
    %15 = math.absf %14 : vector<6x128xf32>
    %16 = vector.shape_cast %15 : vector<6x128xf32> to vector<1x6x128xf32>
    %cst_10 = arith.constant dense<0.000000e+00> : vector<1xf32>
    %17 = vector.multi_reduction <add>, %16, %cst_10 [1, 2] : vector<1x6x128xf32> to vector<1xf32>
    %18 = vector.shape_cast %17 : vector<1xf32> to vector<1x1x1xf32>
    %19 = vector.extract %18[0, 0, 0] : f32 from vector<1x1x1xf32>
    %cst_11 = arith.constant 0.00130208337 : f32
    %20 = arith.mulf %19, %cst_11 : f32
    %c1 = arith.constant 1 : index
    %21 = memref.load %arg4[%c1] : memref<2xf32, #tpu.memory_space<smem>>
    memref.store %20, %arg4[%c1] : memref<2xf32, #tpu.memory_space<smem>>
    return
  }
}

</mosaic_0001>

<bundles_post_ra>
// kernel: tpu_custom_call.1
= control target key start
LH: loop header
LB: loop body
LE: loop exit
PB: predicated region body
PF: predicated region fallthrough
CT: control target
= control target key end

     0   :  { %9 = vsyncpa [#allocation3], 0  ;;  %s275_s0 = inlined_call_operand.hbm [shape: f32[4,128], index: 0, kind: input, shape index: {}]   ;;  %s276_s1 = inlined_call_operand.hbm [shape: f32[4,128], index: 1, kind: input, shape index: {}]   ;;  %s277_s2 = inlined_call_operand.hbm [shape: f32[6,128], index: 2, kind: input, shape index: {}]   ;;  %s278_s3 = inlined_call_operand.vmem [shape: f32[6,128], index: 3, kind: input, shape index: {}]   ;;  %s279_s4 = inlined_call_operand.hbm [shape: f32[2], index: 4, kind: output, shape index: {}]  }
   0x1   :  { %10 = vsyncpa [#allocation6], 0 }
   0x2   :  { %11 = vsyncpa [#allocation4], 0  ;;  %s195_s15 = smov [#allocation5]   ;;  %s196_s17 = smov [#allocation2]  }
   0x3   :  { %s28_s16 = sshll.u32 %s195_s15, 4  ;;  %s18_s18 = sshll.u32 %s196_s17, 4  ;;  %s29_s16 = int_to_ptr.vmem [resolvable:$true] %s28_s16  ;;  %s19_s18 = int_to_ptr.vmem [resolvable:$true] %s18_s18 }
   0x4   :  { %s113_s21 = scalar_lea.hbm %s276_s1, 64 }
   0x5   :  { %p114_p0 = scmp.ne.s32.totalorder %s276_s1, %s113_s21  ;;  %p117_p1 = scmp.lt.u32.totalorder %s113_s21, %s276_s1 }
   0x7   :  { %p119_p2 = pnand %p117_p1, %p114_p0 }
   0x9   :  { %122 = shalt.err (!%p119_p2)
}
   0xa   :  { %s123_s26 = scalar_lea.vmem %s29_s16, 64  ;;  %p128_p4 = scmp.lt.s32.totalorder %s29_s16, %s29_s16 }
   0xb   :  { %p124_p3 = scmp.ne.s32.totalorder %s29_s16, %s123_s26  ;;  %p129_p5 = scmp.lt.s32.totalorder %s123_s26, %s123_s26 }
   0xd   :  { %p130_p6 = por %p129_p5, %p128_p4 }
   0xf   :  { %p131_p7 = pnand %p130_p6, %p124_p3 }
  0x11   :  { %134 = shalt.err (!%p131_p7)
}
  0x12   :  { %31 = dma.hbm_to_vmem [thread:$0]  %s276_s1, 64, %s29_s16, [#allocation6]  }
  0x13   :  { %s135_s5 = scalar_lea.hbm %s275_s0, 64 }
  0x14   :  { %p136_p8 = scmp.ne.s32.totalorder %s275_s0, %s135_s5  ;;  %p139_p9 = scmp.lt.u32.totalorder %s135_s5, %s275_s0 }
  0x16   :  { %p141_p10 = pnand %p139_p9, %p136_p8 }
  0x18   :  { %144 = shalt.err (!%p141_p10)
}
  0x19   :  { %s145_s10 = scalar_lea.vmem %s19_s18, 64  ;;  %p150_p12 = scmp.lt.s32.totalorder %s19_s18, %s19_s18 }
  0x1a   :  { %p146_p11 = scmp.ne.s32.totalorder %s19_s18, %s145_s10  ;;  %p151_p13 = scmp.lt.s32.totalorder %s145_s10, %s145_s10 }
  0x1c   :  { %p152_p0 = por %p151_p13, %p150_p12 }
  0x1e   :  { %p153_p1 = pnand %p152_p0, %p146_p11 }
  0x20   :  { %156 = shalt.err (!%p153_p1)
}
  0x21   :  { %21 = dma.hbm_to_vmem [thread:$0]  %s275_s0, 64, %s19_s18, [#allocation3]  }
  0x22   :  { %s197_s12 = smov [#allocation7]   ;;  %s157_s16 = scalar_lea.hbm %s277_s2, 128 }
  0x23   :  { %s38_s13 = sshll.u32 %s197_s12, 4  ;;  %p158_p2 = scmp.ne.s32.totalorder %s277_s2, %s157_s16  ;;  %s39_s13 = int_to_ptr.vmem [resolvable:$true] %s38_s13 }
  0x24   :  { %p161_p3 = scmp.lt.u32.totalorder %s157_s16, %s277_s2 }
  0x26   :  { %p163_p4 = pnand %p161_p3, %p158_p2 }
  0x28   :  { %166 = shalt.err (!%p163_p4)
}
  0x29   :  { %s167_s22 = scalar_lea.vmem %s39_s13, 128  ;;  %p172_p6 = scmp.lt.s32.totalorder %s39_s13, %s39_s13 }
  0x2a   :  { %p168_p5 = scmp.ne.s32.totalorder %s39_s13, %s167_s22  ;;  %p173_p7 = scmp.lt.s32.totalorder %s167_s22, %s167_s22 }
  0x2c   :  { %p174_p8 = por %p173_p7, %p172_p6 }
  0x2e   :  { %p175_p9 = pnand %p174_p8, %p168_p5 }
  0x30   :  { %178 = shalt.err (!%p175_p9)
}
  0x31   :  { %41 = dma.hbm_to_vmem [thread:$0]  %s277_s2, 128, %s39_s13, [#allocation6]  }
  0x32   :  { %189 = dma.done.wait [#allocation3], 64  }
  0x33   :  { %190 = vsyncadd [#allocation3], 4294967232 }
  0x34   :  { %191 = dma.done.wait [#allocation6], 192  }
  0x35   :  { %192 = vsyncadd [#allocation6], 4294967104  ;;  %v53_v0 = vld [vmem:[#allocation2] sm:$0xf]  ;;  %v54_v1 = vld [vmem:[#allocation5] sm:$0xf] }
  0x36   :  { %v57_v2 = vsub.f32 %v53_v0, %v54_v1  ;;  %v55_v3 = vld [vmem:[#allocation7] sm:$0x3f]  ;;  %v56_v4 = vld [vmem:[%s278_s3] sm:$0x3f]  ;;  %vm59_vm0 = vcmask 1043456   ;;  %vm76_vm1 = vcmask 1045504  }
  0x37   :  { %v73_v5 = vmul.f32 9.0, %v56_v4  ;;  %s179_s29 = scalar_lea.hbm %s279_s4, 16 }
  0x38   :  { %v58_v6 = vand.u32 2147483647, %v57_v2  ;;  %p180_p10 = scmp.ne.s32.totalorder %s279_s4, %s179_s29  ;;  %p183_p11 = scmp.lt.u32.totalorder %s179_s29, %s279_s4 }
  0x39   :  { %v74_v7 = vsub.f32 %v55_v3, %v73_v5 }
  0x3a   :  { %v60_v8 = vsel %vm59_vm0, %v58_v6, 0.0  ;;  %p185_p12 = pnand %p183_p11, %p180_p10 }
  0x3b   :  { %61 = vadd.xlane.f32.xlu0 %v60_v8  ;;  %v75_v9 = vand.u32 2147483647, %v74_v7 }
  0x3d   :  { %v77_v10 = vsel %vm76_vm1, %v75_v9, 0.0 }
  0x3f   :  { %78 = vadd.xlane.f32.xlu0 %v77_v10 }
  0xc8   :  { %v62_v11 = vpop.xlane.xlu0 %61 }
  0xc9   :  { %v63_v12 = vrot.slane %v62_v11, 4 }
  0xcb   :  { %v64_v13 = vadd.f32 %v63_v12, %v62_v11 }
  0xcc   :  { %v79_v14 = vpop.xlane.xlu0 %78 }
  0xcd   :  { %v65_v15 = vrot.slane %v64_v13, 2  ;;  %v80_v16 = vrot.slane %v79_v14, 4 }
  0xcf   :  { %v81_v17 = vadd.f32 %v80_v16, %v79_v14  ;;  %v66_v18 = vadd.f32 %v65_v15, %v64_v13 }
  0xd1   :  { %v82_v19 = vrot.slane %v81_v17, 2  ;;  %v67_v20 = vrot.slane %v66_v18, 1 }
  0xd3   :  { %v83_v21 = vadd.f32 %v82_v19, %v81_v17  ;;  %v68_v22 = vadd.f32 %v67_v20, %v66_v18 }
  0xd5   :  { %105 = vpush %v68_v22  ;;  %v84_v23 = vrot.slane %v83_v21, 1 }
  0xd7   :  { %v85_v24 = vadd.f32 %v84_v23, %v83_v21 }
  0xd9   :  { %107 = vpush %v85_v24 }
 0x106   :  { %s106_s2 = spop %105 }
 0x107   :  { %s70_s3 = smul.f32 0.001953125, %s106_s2 }
 0x109   :  { %72 = sst [smem:[#allocation8]] %s70_s3 }
 0x10a   :  { %s108_s25 = spop %107 }
 0x10b   :  { %s87_s26 = smul.f32 0.0013020834, %s108_s25 }
 0x10d   :  { %89 = sst [smem:[#allocation8 + $0x1]] %s87_s26 }
 0x10e   :  { %188 = shalt.err (!%p185_p12)
}
 0x10f   :  { %s198_s8 = smov [#allocation8]  }
 0x110   :  { %97 = dma.smem_to_hbm %s198_s8, 16, %s279_s4, [#allocation4]  }
 0x111   :  { %193 = dma.done.wait [#allocation4], 16  }
 0x112   :  { %194 = vsyncadd [#allocation4], 4294967280 }
 0x113   :  { %101 = sfence }
 0x114   :  { %102 = vsyncpa [#allocation3], 1 }
 0x115   :  { %103 = vsyncpa [#allocation6], 1 }
 0x116   :  { %104 = vsyncpa [#allocation4], 1 }

</bundles_post_ra>
